<compile_context>
chip_gen: v7x
topology: tpu7x:2x2x1
jax: 0.10.0
libtpu: 0.0.40
codegen_flags: <defaults>
</compile_context>

<pallas_src>
import jax
import jax.numpy as jnp
from jax.experimental import pallas as pl
from jax.experimental.pallas import tpu as pltpu


def _round_up(v, m):
    return (v + m - 1) // m * m


def _pad2d(a, shape):
    pads = [(0, t - s) for s, t in zip(a.shape, shape)]
    if any(hi for _, hi in pads):
        a = jnp.pad(a, pads)
    return a


def _pick_tile(dim, cap, gran):
    """Largest tile <= cap (multiple of gran) that minimizes padding waste."""
    dim_r = _round_up(max(int(dim), 1), gran)
    if dim_r <= cap:
        return dim_r
    n_tiles = -(-dim_r // cap)
    return _round_up(-(-dim_r // n_tiles), gran)


def _vmem_limit_bytes(requested):
    # Generation-aware cap: leave headroom below physical VMEM (64 MiB/TC on
    # v7x, 128 MiB on v5e/v6e) for compiler-internal scratch.
    try:
        phys = int(pltpu.get_tpu_info().vmem_capacity_bytes)
    except Exception:  # interpret mode / older jax: be conservative (v7x-like)
        phys = 64 << 20
    budget = (phys * 3) // 4
    return int(min(max(requested * 3 // 2, 8 << 20), budget))


def _make_fc_kernel(use_activation):
    def fc_kernel(x_ref, w_ref, b_ref, o_ref, acc_ref):
        k = pl.program_id(2)  # K (D_in) tile index (reduction, innermost)

        @pl.when(k == 0)
        def _init():
            acc_ref[...] = jnp.zeros_like(acc_ref)

        # Eval-mode dropout is the identity.  tanh is recomputed per (j, k)
        # tile in f32 on the EUP (a free bundle slot while the MXU binds) and
        # the result is fed straight into the MXU as bf16 — no VMEM cache,
        # no store->reload round trip, no cross-N-tile state.
        if use_activation:
            xv = jnp.tanh(x_ref[...].astype(jnp.float32)).astype(w_ref.dtype)
        else:
            xv = x_ref[...].astype(w_ref.dtype)

        # bf16 x bf16 -> f32 accumulate on the MXU (bf16-native on all gens).
        acc_ref[...] += jnp.dot(xv, w_ref[...],
                                preferred_element_type=jnp.float32)

        # Epilogue: single bias add per output tile, lane-dense f32 store.
        @pl.when(k == pl.num_programs(2) - 1)
        def _epilogue():
            o_ref[...] = (acc_ref[...] + b_ref[...]).astype(o_ref.dtype)

    return fc_kernel


def prepare_fc_params(w, b, *, mm_dtype=jnp.bfloat16, tk=None, tn=None):
    """One-time weight preparation (transpose + pad + bf16 cast), hoisted out
    of the per-call path.

    w: [D_out, D_in] f32 (PyTorch nn.Linear layout), b: [D_out] f32.
    """
    D_out, D_in = w.shape
    assert b.shape == (D_out,)

    # N/K tiles are 128-aligned, capped at 512 so double-buffered tiles stay a
    # few MiB — safe for v7x's 64 MiB VMEM as well as v5e/v6e.
    if tn is None:
        tn = _pick_tile(D_out, 512, 128)
    if tk is None:
        tk = _pick_tile(D_in, 512, 128)
    Kp = _round_up(D_in, tk)
    Np = _round_up(D_out, tn)

    # Weight transposed to [D_in, D_out] and stored bf16 in HBM: halves weight
    # DMA traffic and VMEM footprint; zero-padded rows/cols contribute nothing.
    # TODO(synk): optional int8 (v5e/v6e) or fp8-e4m3 (v7x) weight-only
    # quantization would halve weight DMA again for small-batch inference.
    wp = _pad2d(jnp.asarray(w, jnp.float32).T, (Kp, Np)).astype(mm_dtype)
    bp = _pad2d(jnp.asarray(b, jnp.float32).reshape(1, D_out), (1, Np))
    return {"wp": wp, "bp": bp, "tk": tk, "tn": tn,
            "d_in": D_in, "d_out": D_out}


def fc_layer(x, params, *, use_activation=True, tm=None):
    """y = linear(tanh(dropout(x))), eval-mode dropout == identity.

    x: [B, D_in] f32 (or bf16); params: output of prepare_fc_params.
    Returns [B, D_out] f32.
    """
    wp, bp = params["wp"], params["bp"]
    tk, tn = params["tk"], params["tn"]
    D_in, D_out = params["d_in"], params["d_out"]
    B, d_in_x = x.shape
    assert d_in_x == D_in
    Kp, Np = wp.shape

    # M tile: round tiny batches up to the bf16 sublane (16) only — no more
    # 8x over-padding at B=16; cap 512 for large B so the kernel clears the
    # weight-streaming roofline on v6e/v7x (v5e is already roofline at ~256).
    if tm is None:
        tm = _pick_tile(B, 512, 16)
    Bp = _round_up(B, tm)
    gm, gn, gk = Bp // tm, Np // tn, Kp // tk

    # x cast + padded to bf16 once per call: halves x HBM DMA and the largest
    # double-buffered input tile (tanh/accumulation stay f32 in-kernel).
    xp = _pad2d(jnp.asarray(x).astype(wp.dtype), (Bp, Kp))

    mm_bytes = jnp.dtype(wp.dtype).itemsize

    w_index_map = lambda i, j, k: (k, j)
    w_spec = pl.BlockSpec((tk, tn), w_index_map)
    nbuf_w = 2
    # Small-tm regimes are weight-DMA bound: deepen the weight pipeline to
    # hide DMA jitter (one extra tk*tn*2 VMEM buffer).
    if tm <= 256 and gn * gk >= 3:
        try:
            w_spec = pl.BlockSpec((tk, tn), w_index_map,
                                  pipeline_mode=pl.Buffered(3))
            nbuf_w = 3
        except TypeError:
            pass  # older jax without pipeline_mode: plain double buffering

    vmem_bytes = (
        2 * tm * tk * mm_bytes          # x tiles (bf16, double-buffered)
        + nbuf_w * tk * tn * mm_bytes   # w tiles (bf16)
        + 2 * tn * 4                    # bias tiles
        + 2 * tm * tn * 4               # output tiles (f32)
        + tm * tn * 4                   # f32 accumulator scratch
    )
    vmem_limit = _vmem_limit_bytes(vmem_bytes)

    cost = pl.CostEstimate(
        flops=2 * Bp * Kp * Np,
        transcendentals=(gn * Bp * Kp) if use_activation else 0,
        bytes_accessed=int(gn * Bp * Kp * mm_bytes      # x re-read per N tile
                           + gm * Kp * Np * mm_bytes    # w re-read per M tile
                           + Np * 4 + Bp * Np * 4),
    )

    out = pl.pallas_call(
        _make_fc_kernel(use_activation),
        out_shape=jax.ShapeDtypeStruct((Bp, Np), jnp.float32),
        grid_spec=pltpu.PrefetchScalarGridSpec(
            num_scalar_prefetch=0,
            grid=(gm, gn, gk),
            in_specs=[
                pl.BlockSpec((tm, tk), lambda i, j, k: (i, k)),
                w_spec,
                pl.BlockSpec((1, tn), lambda i, j, k: (0, j)),
            ],
            out_specs=pl.BlockSpec((tm, tn), lambda i, j, k: (i, j)),
            scratch_shapes=[pltpu.VMEM((tm, tn), jnp.float32)],
        ),
        compiler_params=pltpu.CompilerParams(
            # tanh is recomputed per (j, k): no cross-N-tile state, so both M
            # and N shard across megacore TensorCores; K is the reduction.
            dimension_semantics=("parallel", "parallel", "arbitrary"),
            vmem_limit_bytes=vmem_limit,
        ),
        cost_estimate=cost,
    )(xp, wp, bp)

    return out[:B, :D_out]


if __name__ == "__main__":
    # Small shapes consistent with FCLayer(input_dim, output_dim).
    B, D_in, D_out = 16, 256, 512

    key = jax.random.PRNGKey(0)
    kx, kw, kb = jax.random.split(key, 3)

    x = jax.random.normal(kx, (B, D_in), dtype=jnp.float32)
    bound = 1.0 / (D_in ** 0.5)
    # Deterministic parameter init, shapes match nn.Linear(input_dim, output_dim).
    w = jax.random.uniform(kw, (D_out, D_in), minval=-bound, maxval=bound,
                           dtype=jnp.float32)   # PyTorch layout [out, in]
    b = jax.random.uniform(kb, (D_out,), minval=-bound, maxval=bound,
                           dtype=jnp.float32)

    # Weight prep runs ONCE (hoisted out of the per-call path).
    params = prepare_fc_params(w, b)
    out = jax.block_until_ready(fc_layer(x, params, use_activation=True))
    assert out.shape == (B, D_out)

    # Reference checks (eval-mode dropout == identity).
    # 1) Tight check against the bf16-input / f32-accumulate reference.
    x_bf = x.astype(jnp.bfloat16).astype(jnp.float32)
    xh = jnp.tanh(x_bf).astype(jnp.bfloat16).astype(jnp.float32)
    wt = w.T.astype(jnp.bfloat16).astype(jnp.float32)
    ref_bf16 = xh @ wt + b
    assert jnp.allclose(out, ref_bf16, atol=2e-3, rtol=2e-3), \
        float(jnp.max(jnp.abs(out - ref_bf16)))
    # 2) Loose check against the full-f32 reference (bf16 quantization noise).
    ref_f32 = jnp.tanh(x) @ w.T + b
    assert jnp.allclose(out, ref_f32, atol=5e-2, rtol=5e-2), \
        float(jnp.max(jnp.abs(out - ref_f32)))

    print("KERNEL_OK")
</pallas_src>

<mosaic_0001>
module attributes {stable_mosaic.version = 11 : i64} {
  func.func @fc_kernel(%arg0: i32, %arg1: i32, %arg2: i32, %arg3: memref<16x256xbf16, #tpu.memory_space<vmem>>, %arg4: memref<256x512xbf16, #tpu.memory_space<vmem>>, %arg5: memref<1x512xf32, #tpu.memory_space<vmem>>, %arg6: memref<16x512xf32, #tpu.memory_space<vmem>>, %arg7: memref<16x512xf32, #tpu.memory_space<vmem>>) attributes {dimension_semantics = [#tpu.dimension_semantics<parallel>, #tpu.dimension_semantics<parallel>, #tpu.dimension_semantics<arbitrary>], iteration_bounds = array<i64: 1, 1, 1>, scalar_prefetch = 0 : i64, scratch_operands = 1 : i64, tpu.core_type = #tpu.core_type<tc>, window_params = [{transform_indices = @transform_0, window_bounds = array<i64: 16, 256>}, {transform_indices = @transform_1, window_bounds = array<i64: 256, 512>}, {transform_indices = @transform_2, window_bounds = array<i64: 1, 512>}, {transform_indices = @transform_3, window_bounds = array<i64: 16, 512>}]} {
    %c0_i32 = arith.constant 0 : i32
    %0 = arith.cmpi eq, %arg2, %c0_i32 : i32
    %1 = arith.extui %0 : i1 to i32
    %c0_i32_0 = arith.constant 0 : i32
    %2 = arith.cmpi ne, %1, %c0_i32_0 : i32
    scf.if %2 {
      %cst_10 = arith.constant 0.000000e+00 : f32
      %15 = vector.broadcast %cst_10 : f32 to vector<16x512xf32>
      %c0_11 = arith.constant 0 : index
      %c0_12 = arith.constant 0 : index
      %16 = vector.load %arg7[%c0_11, %c0_12] : memref<16x512xf32, #tpu.memory_space<vmem>>, vector<16x512xf32>
      tpu.vector_store %arg7[%c0_11, %c0_12], %15 {strides = array<i32>} : memref<16x512xf32, #tpu.memory_space<vmem>>, vector<16x512xf32>,
    } else {
    }
    %c0 = arith.constant 0 : index
    %c0_1 = arith.constant 0 : index
    %3 = vector.load %arg3[%c0, %c0_1] : memref<16x256xbf16, #tpu.memory_space<vmem>>, vector<16x256xbf16>
    %4 = arith.extf %3 : vector<16x256xbf16> to vector<16x256xf32>
    %5 = math.tanh %4 : vector<16x256xf32>
    %6 = arith.truncf %5 : vector<16x256xf32> to vector<16x256xbf16>
    %c0_2 = arith.constant 0 : index
    %c0_3 = arith.constant 0 : index
    %7 = vector.load %arg7[%c0_2, %c0_3] : memref<16x512xf32, #tpu.memory_space<vmem>>, vector<16x512xf32>
    %c0_4 = arith.constant 0 : index
    %c0_5 = arith.constant 0 : index
    %8 = vector.load %arg4[%c0_4, %c0_5] : memref<256x512xbf16, #tpu.memory_space<vmem>>, vector<256x512xbf16>
    %cst = arith.constant dense<0.000000e+00> : vector<16x512xf32>
    %9 = tpu.matmul %6, %8, %cst {dimension_numbers = #tpu.dot_dimension_numbers<[1], [0], [0], [1], [0, 0, 1, 1], [], []>} : vector<16x256xbf16>, vector<256x512xbf16>, vector<16x512xf32> -> vector<16x512xf32>
    %10 = arith.addf %7, %9 : vector<16x512xf32>
    %c0_6 = arith.constant 0 : index
    %c0_7 = arith.constant 0 : index
    %11 = vector.load %arg7[%c0_6, %c0_7] : memref<16x512xf32, #tpu.memory_space<vmem>>, vector<16x512xf32>
    tpu.vector_store %arg7[%c0_6, %c0_7], %10 {strides = array<i32>} : memref<16x512xf32, #tpu.memory_space<vmem>>, vector<16x512xf32>,
    %c0_i32_8 = arith.constant 0 : i32
    %12 = arith.cmpi eq, %arg2, %c0_i32_8 : i32
    %13 = arith.extui %12 : i1 to i32
    %c0_i32_9 = arith.constant 0 : i32
    %14 = arith.cmpi ne, %13, %c0_i32_9 : i32
    scf.if %14 {
      %c0_10 = arith.constant 0 : index
      %c0_11 = arith.constant 0 : index
      %15 = vector.load %arg7[%c0_10, %c0_11] : memref<16x512xf32, #tpu.memory_space<vmem>>, vector<16x512xf32>
      %c0_12 = arith.constant 0 : index
      %c0_13 = arith.constant 0 : index
      %16 = vector.load %arg5[%c0_12, %c0_13] : memref<1x512xf32, #tpu.memory_space<vmem>>, vector<1x512xf32>
      %17 = vector.broadcast %16 : vector<1x512xf32> to vector<16x512xf32>
      %18 = arith.addf %15, %17 : vector<16x512xf32>
      %c0_14 = arith.constant 0 : index
      %c0_15 = arith.constant 0 : index
      %19 = vector.load %arg6[%c0_14, %c0_15] : memref<16x512xf32, #tpu.memory_space<vmem>>, vector<16x512xf32>
      tpu.vector_store %arg6[%c0_14, %c0_15], %18 {strides = array<i32>} : memref<16x512xf32, #tpu.memory_space<vmem>>, vector<16x512xf32>,
    } else {
    }
    return
  }
  func.func @transform_0(%arg0: i32, %arg1: i32, %arg2: i32) -> (i32, i32) {
    %c0_i32 = arith.constant 0 : i32
    return %arg0, %arg2 : i32, i32
  }
  func.func @transform_1(%arg0: i32, %arg1: i32, %arg2: i32) -> (i32, i32) {
    %c0_i32 = arith.constant 0 : i32
    return %arg2, %arg1 : i32, i32
  }
  func.func @transform_2(%arg0: i32, %arg1: i32, %arg2: i32) -> (i32, i32) {
    %c0_i32 = arith.constant 0 : i32
    %c0_i32_0 = arith.constant 0 : i32
    return %c0_i32, %arg1 : i32, i32
  }
  func.func @transform_3(%arg0: i32, %arg1: i32, %arg2: i32) -> (i32, i32) {
    %c0_i32 = arith.constant 0 : i32
    return %arg0, %arg1 : i32, i32
  }
}

</mosaic_0001>

<bundles_post_ra>
// kernel: tpu_custom_call.1
= control target key start
LH: loop header
LB: loop body
LE: loop exit
PB: predicated region body
PF: predicated region fallthrough
CT: control target
= control target key end

     0   :  { %8 = vsyncpa [#allocation4], 0  ;;  %s945_s0 = inlined_call_operand.hbm [shape: bf16[16,256], index: 0, kind: input, shape index: {}]   ;;  %s946_s1 = inlined_call_operand.hbm [shape: bf16[256,512], index: 1, kind: input, shape index: {}]   ;;  %s947_s2 = inlined_call_operand.vmem [shape: f32[1,512], index: 2, kind: input, shape index: {}]   ;;  %s948_s3 = inlined_call_operand.hbm [shape: f32[16,512], index: 3, kind: output, shape index: {}]  }
   0x1   :  { %9 = vsyncpa [#allocation7], 0 }
   0x2   :  { %10 = vsyncpa [#allocation5], 0  ;;  %s877_s12 = smov [#allocation3]   ;;  %s805_s16 = scalar_lea.hbm %s945_s0, 256 }
   0x3   :  { %s16_s13 = sshll.u32 %s877_s12, 4  ;;  %p806_p0 = scmp.ne.s32.totalorder %s945_s0, %s805_s16  ;;  %s17_s13 = int_to_ptr.vmem [resolvable:$true] %s16_s13 }
   0x4   :  { %p809_p1 = scmp.lt.u32.totalorder %s805_s16, %s945_s0 }
   0x6   :  { %p811_p2 = pnand %p809_p1, %p806_p0 }
   0x8   :  { %814 = shalt.err (!%p811_p2)
}
   0x9   :  { %s815_s21 = scalar_lea.vmem %s17_s13, 256  ;;  %p820_p4 = scmp.lt.s32.totalorder %s17_s13, %s17_s13 }
   0xa   :  { %p816_p3 = scmp.ne.s32.totalorder %s17_s13, %s815_s21  ;;  %p821_p5 = scmp.lt.s32.totalorder %s815_s21, %s815_s21 }
   0xc   :  { %p822_p6 = por %p821_p5, %p820_p4 }
   0xe   :  { %p823_p7 = pnand %p822_p6, %p816_p3 }
  0x10   :  { %826 = shalt.err (!%p823_p7)
}
  0x11   :  { %s878_s22 = smov 128   ;;  %s879_s23 = smov 8  }
  0x12   :  { %22 = dma.hbm_to_vmem [thread:$0]  %s945_s0, 256, %s17_s13, [#allocation4], %s878_s22, %s878_s22, %s879_s23  }
  0x13   :  { %s880_s26 = smov [#allocation6]   ;;  %s827_s30 = scalar_lea.hbm %s946_s1, 8192 }
  0x14   :  { %s28_s27 = sshll.u32 %s880_s26, 4  ;;  %p828_p8 = scmp.ne.s32.totalorder %s946_s1, %s827_s30  ;;  %s29_s27 = int_to_ptr.vmem [resolvable:$true] %s28_s27 }
  0x15   :  { %p831_p9 = scmp.lt.u32.totalorder %s827_s30, %s946_s1 }
  0x17   :  { %p833_p10 = pnand %p831_p9, %p828_p8 }
  0x19   :  { %836 = shalt.err (!%p833_p10)
}
  0x1a   :  { %s837_s8 = scalar_lea.vmem %s29_s27, 8192  ;;  %p842_p12 = scmp.lt.s32.totalorder %s29_s27, %s29_s27 }
  0x1b   :  { %p838_p11 = scmp.ne.s32.totalorder %s29_s27, %s837_s8  ;;  %p843_p13 = scmp.lt.s32.totalorder %s837_s8, %s837_s8 }
  0x1d   :  { %p844_p0 = por %p843_p13, %p842_p12 }
  0x1f   :  { %p845_p1 = pnand %p844_p0, %p838_p11 }
  0x21   :  { %848 = shalt.err (!%p845_p1)
}
  0x22   :  { %s881_s0 = smov 256   ;;  %s882_s9 = smov 16  }
  0x23   :  { %34 = dma.hbm_to_vmem [thread:$0]  %s946_s1, 8192, %s29_s27, [#allocation7], %s881_s0, %s881_s0, %s882_s9  }
  0x24   :  { %871 = dma.done.wait [#allocation4], 256  }
  0x25   :  { %872 = vsyncadd [#allocation4], 4294967040 }
  0x26   :  { %873 = dma.done.wait [#allocation7], 8192  }
  0x27   :  { %874 = vsyncadd [#allocation7], 4294959104  ;;  %v701_v0 = vld [vmem:[#allocation6 + $0x4] ss:$16 sps:$4 sm:$0xff]   ;;  %v703_v1 = vld [vmem:[#allocation6 + $0xc] ss:$16 sps:$4 sm:$0xff]  }
  0x28   :  { %459 = vmatprep.subr.bf16.mxu0 %v701_v0  ;;  %v705_v2 = vld [vmem:[#allocation6] ss:$16 sps:$4 sm:$0xff]   ;;  %v706_v3 = vld [vmem:[#allocation6 + $0x8] ss:$16 sps:$4 sm:$0xff]   ;;  %502 = vmatprep.subr.bf16.mxu1 %v703_v1  ;;  %v707_v4 = vld [vmem:[#allocation6 + $0x24] ss:$16 sps:$4 sm:$0xff]  }
  0x29   :  { %460 = vmatpush1.bf16.msra.mxu0 %v705_v2  ;;  %503 = vmatpush1.bf16.msra.mxu1 %v706_v3  ;;  %v709_v5 = vld [vmem:[#allocation6 + $0x2c] ss:$16 sps:$4 sm:$0xff]   ;;  %v711_v6 = vld [vmem:[#allocation6 + $0x20] ss:$16 sps:$4 sm:$0xff]   ;;  %v712_v7 = vld [vmem:[#allocation6 + $0x28] ss:$16 sps:$4 sm:$0xff]  }
  0x2a   :  { %461 = vmatprep.subr.bf16.mxu0 %v707_v4  ;;  %504 = vmatprep.subr.bf16.mxu1 %v709_v5  ;;  %v713_v8 = vld [vmem:[#allocation6 + $0x44] ss:$16 sps:$4 sm:$0xff]   ;;  %v715_v9 = vld [vmem:[#allocation6 + $0x4c] ss:$16 sps:$4 sm:$0xff]   ;;  %v717_v10 = vld [vmem:[#allocation6 + $0x40] ss:$16 sps:$4 sm:$0xff]  }
  0x2b   :  { %v718_v11 = vld [vmem:[#allocation6 + $0x48] ss:$16 sps:$4 sm:$0xff]   ;;  %v719_v12 = vld [vmem:[#allocation6 + $0x64] ss:$16 sps:$4 sm:$0xff]   ;;  %v721_v13 = vld [vmem:[#allocation6 + $0x6c] ss:$16 sps:$4 sm:$0xff]  }
  0x2c   :  { %v723_v14 = vld [vmem:[#allocation6 + $0x60] ss:$16 sps:$4 sm:$0xff]   ;;  %v724_v15 = vld [vmem:[#allocation6 + $0x68] ss:$16 sps:$4 sm:$0xff]   ;;  %v725_v16 = vld [vmem:[#allocation6 + $0x84] ss:$16 sps:$4 sm:$0xff]  }
  0x2d   :  { %462 = vmatpush1.bf16.msra.mxu0 %v711_v6  ;;  %505 = vmatpush1.bf16.msra.mxu1 %v712_v7  ;;  %v727_v17 = vld [vmem:[#allocation6 + $0x8c] ss:$16 sps:$4 sm:$0xff]   ;;  %v729_v18 = vld [vmem:[#allocation6 + $0x80] ss:$16 sps:$4 sm:$0xff]   ;;  %v730_v19 = vld [vmem:[#allocation6 + $0x88] ss:$16 sps:$4 sm:$0xff]  }
  0x2e   :  { %463 = vmatprep.subr.bf16.mxu0 %v713_v8  ;;  %506 = vmatprep.subr.bf16.mxu1 %v715_v9  ;;  %v731_v20 = vld [vmem:[#allocation6 + $0xa4] ss:$16 sps:$4 sm:$0xff]   ;;  %v733_v21 = vld [vmem:[#allocation6 + $0xac] ss:$16 sps:$4 sm:$0xff]   ;;  %v735_v22 = vld [vmem:[#allocation6 + $0xa0] ss:$16 sps:$4 sm:$0xff]  }
  0x2f   :  { %v736_v23 = vld [vmem:[#allocation6 + $0xa8] ss:$16 sps:$4 sm:$0xff]   ;;  %v737_v24 = vld [vmem:[#allocation6 + $0xc4] ss:$16 sps:$4 sm:$0xff]   ;;  %v739_v25 = vld [vmem:[#allocation6 + $0xcc] ss:$16 sps:$4 sm:$0xff]  }
  0x30   :  { %v741_v26 = vld [vmem:[#allocation6 + $0xc0] ss:$16 sps:$4 sm:$0xff]   ;;  %v742_v27 = vld [vmem:[#allocation6 + $0xc8] ss:$16 sps:$4 sm:$0xff]   ;;  %v743_v28 = vld [vmem:[#allocation6 + $0xe4] ss:$16 sps:$4 sm:$0xff]  }
  0x31   :  { %464 = vmatpush1.bf16.msra.mxu0 %v717_v10  ;;  %507 = vmatpush1.bf16.msra.mxu1 %v718_v11  ;;  %v745_v29 = vld [vmem:[#allocation6 + $0xec] ss:$16 sps:$4 sm:$0xff]   ;;  %v747_v30 = vld [vmem:[#allocation6 + $0xe0] ss:$16 sps:$4 sm:$0xff]   ;;  %v748_v31 = vld [vmem:[#allocation6 + $0xe8] ss:$16 sps:$4 sm:$0xff]  }
  0x32   :  { %465 = vmatprep.subr.bf16.mxu0 %v719_v12  ;;  %508 = vmatprep.subr.bf16.mxu1 %v721_v13  ;;  %v749_v32 = vld [vmem:[#allocation6 + $0x104] ss:$16 sps:$4 sm:$0xff]   ;;  %v751_v33 = vld [vmem:[#allocation6 + $0x10c] ss:$16 sps:$4 sm:$0xff]   ;;  %v753_v34 = vld [vmem:[#allocation6 + $0x100] ss:$16 sps:$4 sm:$0xff]   ;;  %v574_v12 = vlaneseq }
  0x33   :  { %v754_v35 = vld [vmem:[#allocation6 + $0x108] ss:$16 sps:$4 sm:$0xff]   ;;  %v755_v36 = vld [vmem:[#allocation6 + $0x124] ss:$16 sps:$4 sm:$0xff]   ;;  %v757_v37 = vld [vmem:[#allocation6 + $0x12c] ss:$16 sps:$4 sm:$0xff]  }
  0x34   :  { %v759_v38 = vld [vmem:[#allocation6 + $0x120] ss:$16 sps:$4 sm:$0xff]   ;;  %v760_v39 = vld [vmem:[#allocation6 + $0x128] ss:$16 sps:$4 sm:$0xff]   ;;  %v761_v40 = vld [vmem:[#allocation6 + $0x144] ss:$16 sps:$4 sm:$0xff]  }
  0x35   :  { %466 = vmatpush1.bf16.msra.mxu0 %v723_v14  ;;  %509 = vmatpush1.bf16.msra.mxu1 %v724_v15  ;;  %v763_v41 = vld [vmem:[#allocation6 + $0x14c] ss:$16 sps:$4 sm:$0xff]   ;;  %v765_v42 = vld [vmem:[#allocation6 + $0x140] ss:$16 sps:$4 sm:$0xff]   ;;  %v766_v43 = vld [vmem:[#allocation6 + $0x148] ss:$16 sps:$4 sm:$0xff]  }
  0x36   :  { %467 = vmatprep.subr.bf16.mxu0 %v725_v16  ;;  %510 = vmatprep.subr.bf16.mxu1 %v727_v17  ;;  %v767_v44 = vld [vmem:[#allocation6 + $0x164] ss:$16 sps:$4 sm:$0xff]   ;;  %v769_v45 = vld [vmem:[#allocation6 + $0x16c] ss:$16 sps:$4 sm:$0xff]   ;;  %v771_v49 = vld [vmem:[#allocation6 + $0x160] ss:$16 sps:$4 sm:$0xff]  }
  0x37   :  { %v55_v46 = vld [vmem:[#allocation3] sm:$0xff]  ;;  %v56_v47 = vld [vmem:[#allocation3 + $0x8] sm:$0xff]  ;;  %v575_v13 = vshrl.u32 %v574_v12, 7  ;;  %s883_s13 = smov [#allocation8]  }
  0x38   :  { %v58_v48 = vunpack.c.h.bf16 %v55_v46  ;;  %v772_v50 = vld [vmem:[#allocation6 + $0x168] ss:$16 sps:$4 sm:$0xff]   ;;  %v60_v51 = vunpack.c.h.bf16 %v56_v47  ;;  %v773_v52 = vld [vmem:[#allocation6 + $0x184] ss:$16 sps:$4 sm:$0xff]   ;;  %v775_v53 = vld [vmem:[#allocation6 + $0x18c] ss:$16 sps:$4 sm:$0xff]   ;;  %v57_v54 = vunpack.c.l.bf16 %v55_v46  ;;  %v59_v55 = vunpack.c.l.bf16 %v56_v47 }
  0x39   :  { %468 = vmatpush1.bf16.msra.mxu0 %v729_v18  ;;  %511 = vmatpush1.bf16.msra.mxu1 %v730_v19  ;;  %v777_v56 = vld [vmem:[#allocation6 + $0x180] ss:$16 sps:$4 sm:$0xff]   ;;  %v778_v57 = vld [vmem:[#allocation6 + $0x188] ss:$16 sps:$4 sm:$0xff]   ;;  %v779_v58 = vld [vmem:[#allocation6 + $0x1a4] ss:$16 sps:$4 sm:$0xff]  }
  0x3a   :  { %469 = vmatprep.subr.bf16.mxu0 %v731_v20  ;;  %512 = vmatprep.subr.bf16.mxu1 %v733_v21  ;;  %797 = vtanh.f32 %v58_v48  ;;  %v781_v59 = vld [vmem:[#allocation6 + $0x1ac] ss:$16 sps:$4 sm:$0xff]   ;;  %v783_v60 = vld [vmem:[#allocation6 + $0x1a0] ss:$16 sps:$4 sm:$0xff]   ;;  %v784_v61 = vld [vmem:[#allocation6 + $0x1a8] ss:$16 sps:$4 sm:$0xff]  }
  0x3b   :  { %799 = vtanh.f32 %v60_v51  ;;  %v785_v62 = vld [vmem:[#allocation6 + $0x1c4] ss:$16 sps:$4 sm:$0xff]   ;;  %v787_v63 = vld [vmem:[#allocation6 + $0x1cc] ss:$16 sps:$4 sm:$0xff]   ;;  %v789_v2 = vld [vmem:[#allocation6 + $0x1c0] ss:$16 sps:$4 sm:$0xff]  }
  0x3c   :  { %801 = vtanh.f32 %v57_v54  ;;  %v790_v3 = vld [vmem:[#allocation6 + $0x1c8] ss:$16 sps:$4 sm:$0xff]   ;;  %v791_v4 = vld [vmem:[#allocation6 + $0x1e4] ss:$16 sps:$4 sm:$0xff]   ;;  %v793_v5 = vld [vmem:[#allocation6 + $0x1ec] ss:$16 sps:$4 sm:$0xff]  }
  0x3d   :  { %470 = vmatpush1.bf16.msra.mxu0 %v735_v22  ;;  %513 = vmatpush1.bf16.msra.mxu1 %v736_v23  ;;  %803 = vtanh.f32 %v59_v55  ;;  %v795_v9 = vld [vmem:[#allocation6 + $0x1e0] ss:$16 sps:$4 sm:$0xff]   ;;  %v796_v10 = vld [vmem:[#allocation6 + $0x1e8] ss:$16 sps:$4 sm:$0xff]   ;;  %v576_v14 = vsub.s32 0, %v575_v13  ;;  %v584_v15 = vsub.s32 2, %v575_v13 }
  0x3e   :  { %471 = vmatprep.subr.bf16.mxu0 %v737_v24  ;;  %514 = vmatprep.subr.bf16.mxu1 %v739_v25  ;;  %v572_v16 = vld [vmem:[%s947_s2] sm:$0xf]  ;;  %v580_v17 = vsub.s32 1, %v575_v13  ;;  %v588_v18 = vsub.s32 3, %v575_v13  ;;  %s615_s14 = sshll.u32 %s883_s13, 4  ;;  %s616_s14 = int_to_ptr.vmem [resolvable:$true] %s615_s14 }
  0x3f   :  { %v577_v19 = vrot.slane %v572_v16, %v576_v14  ;;  %v585_v20 = vrot.slane %v572_v16, %v584_v15  ;;  %s849_s2 = scalar_lea.vmem %s616_s14, 1024  ;;  %p854_p3 = scmp.lt.s32.totalorder %s616_s14, %s616_s14 }
  0x40   :  { %v581_v21 = vrot.slane %v572_v16, %v580_v17  ;;  %v589_v22 = vrot.slane %v572_v16, %v588_v18  ;;  %p850_p2 = scmp.ne.s32.totalorder %s616_s14, %s849_s2  ;;  %p855_p4 = scmp.lt.s32.totalorder %s849_s2, %s849_s2 }
  0x41   :  { %472 = vmatpush1.bf16.msra.mxu0 %v741_v26  ;;  %515 = vmatpush1.bf16.msra.mxu1 %v742_v27 }
  0x42   :  { %473 = vmatprep.subr.bf16.mxu0 %v743_v28  ;;  %516 = vmatprep.subr.bf16.mxu1 %v745_v29  ;;  %p856_p5 = por %p855_p4, %p854_p3 }
  0x44   :  { %v798_v0 = vpop.eup %797  ;;  %p857_p6 = pnand %p856_p5, %p850_p2 }
  0x45   :  { %474 = vmatpush1.bf16.msra.mxu0 %v747_v30  ;;  %517 = vmatpush1.bf16.msra.mxu1 %v748_v31  ;;  %v800_v1 = vpop.eup %799 }
  0x46   :  { %475 = vmatprep.subr.bf16.mxu0 %v749_v32  ;;  %518 = vmatprep.subr.bf16.mxu1 %v751_v33  ;;  %v66_v6 = vpack.c.bf16 %v800_v1, %v798_v0  ;;  %v802_v7 = vpop.eup %801 }
  0x47   :  { %v804_v8 = vpop.eup %803 }
  0x48   :  { %491 = vmatprep.mubr.bf16.mxu0 %v66_v6  ;;  %534 = vmatprep.mubr.bf16.mxu1 %v66_v6  ;;  %v65_v11 = vpack.c.bf16 %v804_v8, %v802_v7 }
  0x49   :  { %476 = vmatpush1.bf16.msra.mxu0 %v753_v34  ;;  %519 = vmatpush1.bf16.msra.mxu1 %v754_v35 }
  0x4a   :  { %477 = vmatprep.subr.bf16.mxu0 %v755_v36  ;;  %520 = vmatprep.subr.bf16.mxu1 %v757_v37 }
  0x4d   :  { %478 = vmatpush1.bf16.msra.mxu0 %v759_v38  ;;  %521 = vmatpush1.bf16.msra.mxu1 %v760_v39 }
  0x4e   :  { %479 = vmatprep.subr.bf16.mxu0 %v761_v40  ;;  %522 = vmatprep.subr.bf16.mxu1 %v763_v41 }
  0x51   :  { %480 = vmatpush1.bf16.msra.mxu0 %v765_v42  ;;  %523 = vmatpush1.bf16.msra.mxu1 %v766_v43 }
  0x52   :  { %481 = vmatprep.subr.bf16.mxu0 %v767_v44  ;;  %524 = vmatprep.subr.bf16.mxu1 %v769_v45 }
  0x55   :  { %482 = vmatpush1.bf16.msra.mxu0 %v771_v49  ;;  %525 = vmatpush1.bf16.msra.mxu1 %v772_v50 }
  0x56   :  { %483 = vmatprep.subr.bf16.mxu0 %v773_v52  ;;  %526 = vmatprep.subr.bf16.mxu1 %v775_v53 }
  0x59   :  { %484 = vmatpush1.bf16.msra.mxu0 %v777_v56  ;;  %527 = vmatpush1.bf16.msra.mxu1 %v778_v57 }
  0x5a   :  { %485 = vmatprep.subr.bf16.mxu0 %v779_v58  ;;  %528 = vmatprep.subr.bf16.mxu1 %v781_v59 }
  0x5d   :  { %486 = vmatpush1.bf16.msra.mxu0 %v783_v60  ;;  %529 = vmatpush1.bf16.msra.mxu1 %v784_v61 }
  0x5e   :  { %487 = vmatprep.subr.bf16.mxu0 %v785_v62  ;;  %530 = vmatprep.subr.bf16.mxu1 %v787_v63 }
  0x61   :  { %488 = vmatpush1.bf16.msra.mxu0 %v789_v2  ;;  %531 = vmatpush1.bf16.msra.mxu1 %v790_v3 }
  0x62   :  { %489 = vmatprep.subr.bf16.mxu0 %v791_v4  ;;  %532 = vmatprep.subr.bf16.mxu1 %v793_v5 }
  0x65   :  { %490 = vmatpush1.bf16.msra.mxu0 %v795_v9  ;;  %533 = vmatpush1.bf16.msra.mxu1 %v796_v10 }
  0x68   :  { %492 = vmatmul.mubr.bf16.vlgmr.msra.gmra.mrb[0].mxu0 %v65_v11  ;;  %535 = vmatmul.mubr.bf16.vlgmr.msra.gmra.mrb[0].mxu1 %v65_v11 }
 0x13b   :  { %v493_v23 = vpop.f32.mrb[0].mxu0  ;;  %v536_v24 = vpop.f32.mrb[0].mxu1 }
 0x13c   :  { %v594_v25 = vadd.f32 %v577_v19, %v493_v23  ;;  %v596_v26 = vadd.f32 %v585_v20, %v536_v24  ;;  %v495_v27 = vpop.f32.mrb[1].mxu0  ;;  %v538_v28 = vpop.f32.mrb[1].mxu1 }
 0x13d   :  { %v595_v29 = vadd.f32 %v581_v21, %v495_v27  ;;  %v597_v30 = vadd.f32 %v589_v22, %v538_v28  ;;  %v497_v31 = vpop.f32.mrb[2].mxu0  ;;  %v540_v32 = vpop.f32.mrb[2].mxu1 }
 0x13e   :  { %602 = vst [vmem:[#allocation8] sm:$0xff] %v594_v25  ;;  %604 = vst [vmem:[#allocation8 + $0x10] sm:$0xff] %v596_v26  ;;  %v598_v33 = vadd.f32 %v577_v19, %v497_v31  ;;  %v600_v34 = vadd.f32 %v585_v20, %v540_v32  ;;  %v499_v35 = vpop.f32.mrb[3].mxu0  ;;  %v542_v36 = vpop.f32.mrb[3].mxu1 }
 0x13f   :  { %603 = vst [vmem:[#allocation8 + $0x8] sm:$0xff] %v595_v29  ;;  %605 = vst [vmem:[#allocation8 + $0x18] sm:$0xff] %v597_v30  ;;  %v599_v37 = vadd.f32 %v581_v21, %v499_v35  ;;  %v601_v38 = vadd.f32 %v589_v22, %v542_v36 }
 0x140   :  { %606 = vst [vmem:[#allocation8 + $0x20] sm:$0xff] %v598_v33  ;;  %608 = vst [vmem:[#allocation8 + $0x30] sm:$0xff] %v600_v34 }
 0x141   :  { %607 = vst [vmem:[#allocation8 + $0x28] sm:$0xff] %v599_v37  ;;  %609 = vst [vmem:[#allocation8 + $0x38] sm:$0xff] %v601_v38 }
 0x142   :  { %860 = shalt.err (!%p857_p6)
}
 0x143   :  { %s861_s17 = scalar_lea.hbm %s948_s3, 1024 }
 0x144   :  { %p862_p7 = scmp.ne.s32.totalorder %s948_s3, %s861_s17  ;;  %p865_p8 = scmp.lt.u32.totalorder %s861_s17, %s948_s3 }
 0x146   :  { %p867_p9 = pnand %p865_p8, %p862_p7 }
 0x148   :  { %870 = shalt.err (!%p867_p9)
}
 0x149   :  { %s884_s22 = smov 512   ;;  %s885_s23 = smov 32  }
 0x14a   :  { %621 = dma.vmem_to_hbm [thread:$0]  %s616_s14, 1024, %s948_s3, [#allocation5], %s884_s22, %s884_s22, %s885_s23  }
 0x14b   :  { %875 = dma.done.wait [#allocation5], 1024  }
 0x14c   :  { %876 = vsyncadd [#allocation5], 4294966272 }
 0x14d   :  { %625 = vsyncpa [#allocation4], 1 }
 0x14e   :  { %626 = vsyncpa [#allocation7], 1 }
 0x14f   :  { %627 = vsyncpa [#allocation5], 1 }

</bundles_post_ra>
